<compile_context>
chip_gen: v7x
topology: tpu7x:2x2x1
jax: 0.10.0
libtpu: 0.0.40
codegen_flags: <defaults>
</compile_context>

<pallas_src>
import functools

import jax
import jax.numpy as jnp
from jax.experimental import pallas as pl
from jax.experimental.pallas import tpu as pltpu


def _make_criterion_kernel(sd, hidden_pad, out_size, n_elem):
    """Build the fused criterion kernel with all static dims closed over."""
    n_elem_f = float(n_elem)
    inv_n = 1.0 / n_elem_f
    row_g = sd + hidden_pad          # gamma row in the packed parameter slab
    row_b = row_g + 1                # beta row
    row_b2 = row_g + 2               # Linear2 bias row

    def kernel(x_ref, label_ref, p_ref, loss_ref, acc_ref, pred_ref):
        x = x_ref[...]                                   # (B, sd)        f32
        label = label_ref[...]                           # (B, out_size)  f32 {0,1}

        # Static, tile-aligned slices of the single packed parameter slab.
        w1 = p_ref[0:sd, 0:hidden_pad]                   # pool-folded Linear1
        w2 = p_ref[sd:sd + hidden_pad, 0:out_size]       # Linear2 weight
        gamma = p_ref[row_g:row_g + 1, 0:hidden_pad]
        beta = p_ref[row_b:row_b + 1, 0:hidden_pad]
        b2 = p_ref[row_b2:row_b2 + 1, 0:out_size]

        # Linear1 (bias absorbed by training-mode BatchNorm) -> BN (batch
        # stats, biased var) -> ReLU -> Linear2.
        h = jnp.dot(x, w1, preferred_element_type=jnp.float32)
        mu = jnp.mean(h, axis=0, keepdims=True)
        var = jnp.mean((h - mu) ** 2, axis=0, keepdims=True)
        h = gamma * (h - mu) * jax.lax.rsqrt(var + 1e-5) + beta
        h = jnp.maximum(h, 0.0)
        z = jnp.dot(h, w2, preferred_element_type=jnp.float32) + b2   # logits

        # predsIndex: sigmoid(z) > 0.5  <=>  z > 0  (no exp / divide)
        pred = z > 0.0
        pred_ref[...] = pred.astype(jnp.int8)

        # BCEWithLogitsLoss(pos_weight = #zeros/#ones), mean reduction:
        #   per_elem = pw*y*softplus(-z) + (1-y)*softplus(z)
        #            = pw*y*(sp - z) + (1-y)*sp        with sp = softplus(z)
        # => sum(per_elem) = pw*S2 + S3,   S1 = sum(y) (for pw),
        #    S2 = sum(y*(sp-z)), S3 = sum((1-y)*sp), S4 = sum(pred == y).
        # The four sums are independent -> one fused cross-lane reduce.
        sp = jnp.maximum(z, 0.0) + jnp.log1p(jnp.exp(-jnp.abs(z)))
        eqf = (pred == (label > 0.5)).astype(jnp.float32)

        rows = jnp.concatenate(
            [jnp.sum(label, axis=0, keepdims=True),
             jnp.sum(label * (sp - z), axis=0, keepdims=True),
             jnp.sum((1.0 - label) * sp, axis=0, keepdims=True),
             jnp.sum(eqf, axis=0, keepdims=True)],
            axis=0)                                      # (4, out_size)
        sums = jnp.sum(rows, axis=1, keepdims=True)      # (4, 1): single XLU reduce

        pos = sums[0:1, 0:1]
        s2 = sums[1:2, 0:1]
        s3 = sums[2:3, 0:1]
        s4 = sums[3:4, 0:1]

        # pos_weight = (n - pos)/pos: EUP approx reciprocal (error ~2^-12);
        # 1/n folded as a compile-time constant multiply.
        pw = (n_elem_f - pos) * pl.reciprocal(pos, approx=True)
        loss_ref[...] = (pw * s2 + s3) * inv_n
        acc_ref[...] = s4 * inv_n

    return kernel


def make_params(key, num_features, hidden, output_size):
    """Deterministic synthetic parameters (shapes match the torch module)."""
    k1, k2, k3, k4 = jax.random.split(key, 4)
    bound1 = 1.0 / float(num_features) ** 0.5
    w1 = jax.random.uniform(k1, (num_features, hidden), jnp.float32, -bound1, bound1)
    b1 = jax.random.uniform(k2, (1, hidden), jnp.float32, -bound1, bound1)
    gamma = jnp.ones((1, hidden), jnp.float32)      # BatchNorm1d weight
    beta = jnp.zeros((1, hidden), jnp.float32)      # BatchNorm1d bias
    bound2 = 1.0 / float(hidden) ** 0.5
    w2 = jax.random.uniform(k3, (hidden, output_size), jnp.float32, -bound2, bound2)
    b2 = jax.random.uniform(k4, (1, output_size), jnp.float32, -bound2, bound2)
    return w1, b1, gamma, beta, w2, b2


def fold_params_to_slab(params, seq, dim, pool, hidden_pad=128):
    """One-time parameter prep:
       1) fold AvgPool1d(k, stride=k, pad=0) + permute + D-major flatten into w1
          (feats = x_flat @ P  =>  feats @ w1 = x_flat @ (P @ w1));
       2) drop b1 (cancelled exactly by training-mode BatchNorm mean subtract);
       3) zero-pad hidden -> hidden_pad lanes (padded cols stay exactly zero);
       4) pack [w1_eff ; w2 ; gamma ; beta ; b2] into ONE f32 slab so the
          kernel takes a single parameter input (one HBM->VMEM DMA)."""
    kernel_size, padding, stride = pool
    assert padding == 0 and stride == kernel_size, "fold assumes stride==kernel, pad=0"
    w1, _b1, gamma, beta, w2, b2 = params            # b1 intentionally dropped
    hidden = w1.shape[1]
    out_size = w2.shape[1]
    pooled = seq // kernel_size
    sd = seq * dim

    i = jnp.arange(sd)
    s_idx, d_idx = i // dim, i % dim                 # flat input index -> (s, d)
    f = jnp.arange(dim * pooled)
    dp_idx, t_idx = f // pooled, f % pooled          # feature index -> (d', t)
    P = ((d_idx[:, None] == dp_idx[None, :]) &
         ((s_idx // kernel_size)[:, None] == t_idx[None, :])
         ).astype(jnp.float32) / float(kernel_size)  # (sd, dim*pooled)
    w1_eff = P @ w1                                  # (sd, hidden)

    assert hidden <= hidden_pad
    width = max(hidden_pad, out_size)
    rows = sd + hidden_pad + 3
    rows_pad = -(-rows // 8) * 8                     # sublane-align the slab
    slab = jnp.zeros((rows_pad, width), jnp.float32)
    slab = slab.at[:sd, :hidden].set(w1_eff)
    slab = slab.at[sd:sd + hidden, :out_size].set(w2)
    slab = slab.at[sd + hidden_pad + 0, :hidden].set(gamma.reshape(-1))
    slab = slab.at[sd + hidden_pad + 1, :hidden].set(beta.reshape(-1))
    slab = slab.at[sd + hidden_pad + 2, :out_size].set(b2.reshape(-1))
    return slab


@functools.partial(jax.jit, static_argnames=("hidden_pad", "output_size"))
def transcription_criterion_forward(x, encoded_data, label, param_slab, *,
                                    hidden_pad, output_size):
    """Returns (loss (1,1), accuracy (1,1), predsIndex (B, output_size) bool)."""
    del encoded_data  # unused in the torch forward as well
    B, S, D = x.shape
    sd = S * D
    x_flat = x.reshape(B, sd).astype(jnp.float32)            # contiguous reshape only
    label2 = label.reshape(B, output_size).astype(jnp.float32)

    kernel = _make_criterion_kernel(sd, hidden_pad, output_size, B * output_size)
    vmem = pl.BlockSpec(memory_space=pltpu.MemorySpace.VMEM)
    cost = pl.CostEstimate(
        flops=int(2 * B * sd * hidden_pad + 2 * B * hidden_pad * output_size
                  + 16 * B * output_size),
        transcendentals=int(2 * B * output_size + hidden_pad + 1),
        bytes_accessed=int((param_slab.size + x_flat.size + label2.size) * 4
                           + B * output_size + 8),
    )
    loss, acc, pred_i8 = pl.pallas_call(
        kernel,
        out_shape=(jax.ShapeDtypeStruct((1, 1), jnp.float32),          # loss.view(1,-1)
                   jax.ShapeDtypeStruct((1, 1), jnp.float32),          # accuracy
                   jax.ShapeDtypeStruct((B, output_size), jnp.int8)),  # predsIndex
        in_specs=[vmem, vmem, vmem],
        out_specs=(vmem, vmem, vmem),
        cost_estimate=cost,
    )(x_flat, label2, param_slab)
    # Tiny convert inside the same jit; keeps the module's bool interface.
    return loss, acc, pred_i8.astype(jnp.bool_)


def _reference(x, label, params, pool, output_size):
    """Pure-JAX reference of the torch forward (unfolded, unpadded, f32)."""
    B, S, D = x.shape
    k, p, s = pool
    xp = x.reshape(B, S // k, k, D).mean(axis=2)
    feats = jnp.transpose(xp, (0, 2, 1)).reshape(B, -1)
    lab = label.reshape(B, output_size).astype(jnp.float32)
    w1, b1, gamma, beta, w2, b2 = params
    h = feats @ w1 + b1
    mu = h.mean(0, keepdims=True)
    var = ((h - mu) ** 2).mean(0, keepdims=True)
    h = gamma * (h - mu) / jnp.sqrt(var + 1e-5) + beta
    h = jnp.maximum(h, 0.0)
    z = h @ w2 + b2
    pred = jax.nn.sigmoid(z) > 0.5
    pw = jnp.sum(lab == 0).astype(jnp.float32) / jnp.sum(lab)
    per = pw * lab * jax.nn.softplus(-z) + (1 - lab) * jax.nn.softplus(z)
    loss = per.mean()
    acc = jnp.mean((pred.astype(jnp.float32) == lab).astype(jnp.float32))
    return loss, acc, pred, z


if __name__ == "__main__":
    # Module configuration (small, self-consistent):
    hiddenGar = 32          # dimAR
    sizeWindow = 128
    downSampling = 16       # -> seqSize = sizeWindow // downSampling = 8
    numClasses = 8
    numInstruments = 4
    pool = (2, 0, 2)        # (kernelSize, padding, stride)
    B = 2

    S = sizeWindow // downSampling                                   # 8
    pooled_len = (S + 2 * pool[1] - pool[0]) // pool[2] + 1          # 4
    num_features = hiddenGar * pooled_len                            # 128
    output_size = numInstruments * numClasses * (S // pool[0])       # 128
    hidden_pad = 128

    key = jax.random.PRNGKey(0)
    kx, kl, kp, ke = jax.random.split(key, 4)
    x = jax.random.normal(kx, (B, S, hiddenGar), jnp.float32)
    encoded = jax.random.normal(ke, (B, S, hiddenGar), jnp.float32)  # unused (matches torch)
    label = jax.random.bernoulli(
        kl, 0.3, (B, numInstruments, S // pool[0], numClasses)).astype(jnp.float32)

    params = make_params(kp, num_features, 100, output_size)
    # One-time parameter prep (pool fold + b1 drop + lane padding + packing).
    slab = fold_params_to_slab(params, S, hiddenGar, pool, hidden_pad=hidden_pad)

    loss, acc, preds = transcription_criterion_forward(
        x, encoded, label, slab, hidden_pad=hidden_pad, output_size=output_size)
    jax.block_until_ready((loss, acc, preds))

    # Sanity check against pure-JAX reference
    ref_loss, ref_acc, ref_pred, ref_z = _reference(x, label, params, pool, output_size)
    assert loss.shape == (1, 1) and acc.shape == (1, 1)
    assert preds.shape == (B, output_size) and preds.dtype == jnp.bool_
    assert jnp.allclose(loss[0, 0], ref_loss, rtol=2e-3, atol=2e-3)
    assert jnp.allclose(acc[0, 0], ref_acc, rtol=4e-3, atol=4e-3)
    # Exact pred parity except (theoretically) at logits numerically at 0.
    assert bool(jnp.all((preds == ref_pred) | (jnp.abs(ref_z) < 1e-4)))

    print("KERNEL_OK")
</pallas_src>

<mosaic_0001>
module attributes {stable_mosaic.version = 11 : i64} {
  func.func @kernel(%arg0: memref<2x256xf32, #tpu.memory_space<vmem>>, %arg1: memref<2x128xf32, #tpu.memory_space<vmem>>, %arg2: memref<392x128xf32, #tpu.memory_space<vmem>>, %arg3: memref<1x1xf32, #tpu.memory_space<vmem>>, %arg4: memref<1x1xf32, #tpu.memory_space<vmem>>, %arg5: memref<2x128xi8, #tpu.memory_space<vmem>>) attributes {dimension_semantics = [], scalar_prefetch = 0 : i64, scratch_operands = 0 : i64, tpu.core_type = #tpu.core_type<tc>} {
    %c0 = arith.constant 0 : index
    %c0_0 = arith.constant 0 : index
    %0 = vector.load %arg0[%c0, %c0_0] : memref<2x256xf32, #tpu.memory_space<vmem>>, vector<2x256xf32>
    %c0_1 = arith.constant 0 : index
    %c0_2 = arith.constant 0 : index
    %1 = vector.load %arg1[%c0_1, %c0_2] : memref<2x128xf32, #tpu.memory_space<vmem>>, vector<2x128xf32>
    %c0_3 = arith.constant 0 : index
    %c0_4 = arith.constant 0 : index
    %2 = vector.load %arg2[%c0_3, %c0_4] : memref<392x128xf32, #tpu.memory_space<vmem>>, vector<256x128xf32>
    %c256 = arith.constant 256 : index
    %c0_5 = arith.constant 0 : index
    %3 = vector.load %arg2[%c256, %c0_5] : memref<392x128xf32, #tpu.memory_space<vmem>>, vector<128x128xf32>
    %c384 = arith.constant 384 : index
    %c0_6 = arith.constant 0 : index
    %4 = vector.load %arg2[%c384, %c0_6] : memref<392x128xf32, #tpu.memory_space<vmem>>, vector<1x128xf32>
    %c385 = arith.constant 385 : index
    %c0_7 = arith.constant 0 : index
    %5 = vector.load %arg2[%c385, %c0_7] : memref<392x128xf32, #tpu.memory_space<vmem>>, vector<1x128xf32>
    %c386 = arith.constant 386 : index
    %c0_8 = arith.constant 0 : index
    %6 = vector.load %arg2[%c386, %c0_8] : memref<392x128xf32, #tpu.memory_space<vmem>>, vector<1x128xf32>
    %cst = arith.constant dense<0.000000e+00> : vector<2x128xf32>
    %7 = tpu.matmul %0, %2, %cst {dimension_numbers = #tpu.dot_dimension_numbers<[1], [0], [0], [1], [0, 0, 1, 1], [], []>} : vector<2x256xf32>, vector<256x128xf32>, vector<2x128xf32> -> vector<2x128xf32>
    %cst_9 = arith.constant dense<0.000000e+00> : vector<128xf32>
    %8 = vector.multi_reduction <add>, %7, %cst_9 [0] : vector<2x128xf32> to vector<128xf32>
    %9 = vector.shape_cast %8 : vector<128xf32> to vector<1x128xf32>
    %cst_10 = arith.constant 2.000000e+00 : f32
    %10 = vector.broadcast %cst_10 : f32 to vector<1x128xf32>
    %11 = arith.divf %9, %10 : vector<1x128xf32>
    %12 = vector.broadcast %11 : vector<1x128xf32> to vector<2x128xf32>
    %13 = arith.subf %7, %12 : vector<2x128xf32>
    %14 = arith.mulf %13, %13 : vector<2x128xf32>
    %cst_11 = arith.constant dense<0.000000e+00> : vector<128xf32>
    %15 = vector.multi_reduction <add>, %14, %cst_11 [0] : vector<2x128xf32> to vector<128xf32>
    %16 = vector.shape_cast %15 : vector<128xf32> to vector<1x128xf32>
    %cst_12 = arith.constant 2.000000e+00 : f32
    %17 = vector.broadcast %cst_12 : f32 to vector<1x128xf32>
    %18 = arith.divf %16, %17 : vector<1x128xf32>
    %19 = vector.broadcast %11 : vector<1x128xf32> to vector<2x128xf32>
    %20 = arith.subf %7, %19 : vector<2x128xf32>
    %21 = vector.broadcast %4 : vector<1x128xf32> to vector<2x128xf32>
    %22 = arith.mulf %21, %20 : vector<2x128xf32>
    %cst_13 = arith.constant 9.99999974E-6 : f32
    %23 = vector.broadcast %cst_13 : f32 to vector<1x128xf32>
    %24 = arith.addf %18, %23 : vector<1x128xf32>
    %25 = math.rsqrt %24 : vector<1x128xf32>
    %26 = vector.broadcast %25 : vector<1x128xf32> to vector<2x128xf32>
    %27 = arith.mulf %22, %26 : vector<2x128xf32>
    %28 = vector.broadcast %5 : vector<1x128xf32> to vector<2x128xf32>
    %29 = arith.addf %27, %28 : vector<2x128xf32>
    %cst_14 = arith.constant 0.000000e+00 : f32
    %30 = vector.broadcast %cst_14 : f32 to vector<2x128xf32>
    %31 = arith.maximumf %29, %30 : vector<2x128xf32>
    %cst_15 = arith.constant dense<0.000000e+00> : vector<2x128xf32>
    %32 = tpu.matmul %31, %3, %cst_15 {dimension_numbers = #tpu.dot_dimension_numbers<[1], [0], [0], [1], [0, 0, 1, 1], [], []>} : vector<2x128xf32>, vector<128x128xf32>, vector<2x128xf32> -> vector<2x128xf32>
    %33 = vector.broadcast %6 : vector<1x128xf32> to vector<2x128xf32>
    %34 = arith.addf %32, %33 : vector<2x128xf32>
    %cst_16 = arith.constant 0.000000e+00 : f32
    %35 = vector.broadcast %cst_16 : f32 to vector<2x128xf32>
    %36 = arith.cmpf ogt, %34, %35 : vector<2x128xf32>
    %37 = arith.extui %36 : vector<2x128xi1> to vector<2x128xi8>
    %c0_17 = arith.constant 0 : index
    %c0_18 = arith.constant 0 : index
    %38 = vector.load %arg5[%c0_17, %c0_18] : memref<2x128xi8, #tpu.memory_space<vmem>>, vector<2x128xi8>
    tpu.vector_store %arg5[%c0_17, %c0_18], %37 {strides = array<i32>} : memref<2x128xi8, #tpu.memory_space<vmem>>, vector<2x128xi8>,
    %cst_19 = arith.constant 0.000000e+00 : f32
    %39 = vector.broadcast %cst_19 : f32 to vector<2x128xf32>
    %40 = arith.maximumf %34, %39 : vector<2x128xf32>
    %41 = math.absf %34 : vector<2x128xf32>
    %cst_20 = arith.constant 0.000000e+00 : f32
    %42 = vector.broadcast %cst_20 : f32 to vector<2x128xf32>
    %43 = arith.subf %42, %41 : vector<2x128xf32>
    %44 = math.exp %43 : vector<2x128xf32>
    %45 = math.log1p %44 : vector<2x128xf32>
    %46 = arith.addf %40, %45 : vector<2x128xf32>
    %cst_21 = arith.constant 5.000000e-01 : f32
    %47 = vector.broadcast %cst_21 : f32 to vector<2x128xf32>
    %48 = arith.cmpf ogt, %1, %47 : vector<2x128xf32>
    %49 = arith.xori %36, %48 : vector<2x128xi1>
    %cst_22 = arith.constant dense<true> : vector<2x128xi1>
    %50 = arith.xori %49, %cst_22 : vector<2x128xi1>
    %51 = arith.extui %50 : vector<2x128xi1> to vector<2x128xi32>
    %52 = arith.sitofp %51 : vector<2x128xi32> to vector<2x128xf32>
    %cst_23 = arith.constant dense<0.000000e+00> : vector<128xf32>
    %53 = vector.multi_reduction <add>, %1, %cst_23 [0] : vector<2x128xf32> to vector<128xf32>
    %54 = vector.shape_cast %53 : vector<128xf32> to vector<1x128xf32>
    %55 = arith.subf %46, %34 : vector<2x128xf32>
    %56 = arith.mulf %1, %55 : vector<2x128xf32>
    %cst_24 = arith.constant dense<0.000000e+00> : vector<128xf32>
    %57 = vector.multi_reduction <add>, %56, %cst_24 [0] : vector<2x128xf32> to vector<128xf32>
    %58 = vector.shape_cast %57 : vector<128xf32> to vector<1x128xf32>
    %cst_25 = arith.constant 1.000000e+00 : f32
    %59 = vector.broadcast %cst_25 : f32 to vector<2x128xf32>
    %60 = arith.subf %59, %1 : vector<2x128xf32>
    %61 = arith.mulf %60, %46 : vector<2x128xf32>
    %cst_26 = arith.constant dense<0.000000e+00> : vector<128xf32>
    %62 = vector.multi_reduction <add>, %61, %cst_26 [0] : vector<2x128xf32> to vector<128xf32>
    %63 = vector.shape_cast %62 : vector<128xf32> to vector<1x128xf32>
    %cst_27 = arith.constant dense<0.000000e+00> : vector<128xf32>
    %64 = vector.multi_reduction <add>, %52, %cst_27 [0] : vector<2x128xf32> to vector<128xf32>
    %65 = vector.shape_cast %64 : vector<128xf32> to vector<1x128xf32>
    %66 = tpu.concatenate %54, %58, %63, %65 in 0 : vector<1x128xf32>, vector<1x128xf32>, vector<1x128xf32>, vector<1x128xf32> -> vector<4x128xf32>
    %cst_28 = arith.constant dense<0.000000e+00> : vector<4xf32>
    %67 = vector.multi_reduction <add>, %66, %cst_28 [1] : vector<4x128xf32> to vector<4xf32>
    %68 = vector.shape_cast %67 : vector<4xf32> to vector<4x1xf32>
    %69 = vector.extract_strided_slice %68 {offsets = [0, 0], sizes = [1, 1], strides = [1, 1]} : vector<4x1xf32> to vector<1x1xf32>
    %70 = vector.extract_strided_slice %68 {offsets = [1, 0], sizes = [1, 1], strides = [1, 1]} : vector<4x1xf32> to vector<1x1xf32>
    %71 = vector.extract_strided_slice %68 {offsets = [2, 0], sizes = [1, 1], strides = [1, 1]} : vector<4x1xf32> to vector<1x1xf32>
    %72 = vector.extract_strided_slice %68 {offsets = [3, 0], sizes = [1, 1], strides = [1, 1]} : vector<4x1xf32> to vector<1x1xf32>
    %cst_29 = arith.constant 2.560000e+02 : f32
    %73 = vector.broadcast %cst_29 : f32 to vector<1x1xf32>
    %74 = arith.subf %73, %69 : vector<1x1xf32>
    %75 = tpu.reciprocal %69 {approx = true} : vector<1x1xf32> -> vector<1x1xf32>
    %76 = arith.mulf %74, %75 : vector<1x1xf32>
    %77 = arith.mulf %76, %70 : vector<1x1xf32>
    %78 = arith.addf %77, %71 : vector<1x1xf32>
    %cst_30 = arith.constant 3.906250e-03 : f32
    %79 = vector.broadcast %cst_30 : f32 to vector<1x1xf32>
    %80 = arith.mulf %78, %79 : vector<1x1xf32>
    %c0_31 = arith.constant 0 : index
    %c0_32 = arith.constant 0 : index
    %81 = vector.load %arg3[%c0_31, %c0_32] : memref<1x1xf32, #tpu.memory_space<vmem>>, vector<1x1xf32>
    tpu.vector_store %arg3[%c0_31, %c0_32], %80 {strides = array<i32>} : memref<1x1xf32, #tpu.memory_space<vmem>>, vector<1x1xf32>,
    %cst_33 = arith.constant 3.906250e-03 : f32
    %82 = vector.broadcast %cst_33 : f32 to vector<1x1xf32>
    %83 = arith.mulf %72, %82 : vector<1x1xf32>
    %c0_34 = arith.constant 0 : index
    %c0_35 = arith.constant 0 : index
    %84 = vector.load %arg4[%c0_34, %c0_35] : memref<1x1xf32, #tpu.memory_space<vmem>>, vector<1x1xf32>
    tpu.vector_store %arg4[%c0_34, %c0_35], %83 {strides = array<i32>} : memref<1x1xf32, #tpu.memory_space<vmem>>, vector<1x1xf32>,
    return
  }
}

</mosaic_0001>

<bundles_post_ra>
// kernel: transcription_criterion_forward.1
= control target key start
LH: loop header
LB: loop body
LE: loop exit
PB: predicated region body
PF: predicated region fallthrough
CT: control target
= control target key end

     0   :  { %11 = vsyncpa [#allocation3], 0  ;;  %s737_s0 = inlined_call_operand.vmem [shape: f32[2,256], index: 0, kind: input, shape index: {}]   ;;  %s738_s1 = inlined_call_operand.vmem [shape: f32[2,128], index: 1, kind: input, shape index: {}]   ;;  %s739_s2 = inlined_call_operand.hbm [shape: f32[392,128], index: 2, kind: input, shape index: {}]   ;;  %s740_s3 = inlined_call_operand.hbm [shape: f32[1,1], index: 3, kind: output, shape index: {0}]   ;;  %s741_s4 = inlined_call_operand.hbm [shape: f32[1,1], index: 4, kind: output, shape index: {1}]   ;;  %s742_s5 = inlined_call_operand.vmem [shape: s8[2,128], index: 5, kind: output, shape index: {2}]  }
   0x1   :  { %12 = vsyncpa [#allocation4], 0 }
   0x2   :  { %13 = vsyncpa [#allocation7], 0  ;;  %s635_s18 = smov [#allocation2]   ;;  %s563_s22 = scalar_lea.hbm %s739_s2, 6272 }
   0x3   :  { %s23_s19 = sshll.u32 %s635_s18, 4  ;;  %p564_p0 = scmp.ne.s32.totalorder %s739_s2, %s563_s22  ;;  %s24_s19 = int_to_ptr.vmem [resolvable:$true] %s23_s19 }
   0x4   :  { %p567_p1 = scmp.lt.u32.totalorder %s563_s22, %s739_s2 }
   0x6   :  { %p569_p2 = pnand %p567_p1, %p564_p0 }
   0x8   :  { %572 = shalt.err (!%p569_p2)
}
   0x9   :  { %s573_s27 = scalar_lea.vmem %s24_s19, 6272  ;;  %p578_p4 = scmp.lt.s32.totalorder %s24_s19, %s24_s19 }
   0xa   :  { %p574_p3 = scmp.ne.s32.totalorder %s24_s19, %s573_s27  ;;  %p579_p5 = scmp.lt.s32.totalorder %s573_s27, %s573_s27 }
   0xc   :  { %p580_p6 = por %p579_p5, %p578_p4 }
   0xe   :  { %p581_p7 = pnand %p580_p6, %p574_p3 }
  0x10   :  { %584 = shalt.err (!%p581_p7)
}
  0x11   :  { %s636_s28 = smov 128   ;;  %s637_s29 = smov 8  }
  0x12   :  { %29 = dma.hbm_to_vmem [thread:$0]  %s739_s2, 6272, %s24_s19, [#allocation3], %s636_s28, %s636_s28, %s637_s29  }
  0x13   :  { %629 = dma.done.wait [#allocation3], 6272  }
  0x14   :  { %630 = vsyncadd [#allocation3], 4294961024  ;;  %v53_v0 = vld [vmem:[#allocation2 + $0x80] sm:$0xff]  ;;  %v54_v1 = vld [vmem:[#allocation2 + $0x88] sm:$0xff]  ;;  %v638_v53 = vmov 0.0|0.0   ;;  %vm639_vm0 = vmmov 0  }
  0x15   :  { %v37_v2 = vld [vmem:[#allocation2] sm:$0xff]  ;;  %v489_v3 = vpack.c.bf16 %v54_v1, %v53_v0  ;;  %v38_v4 = vld [vmem:[#allocation2 + $0x8] sm:$0xff]  ;;  %v55_v5 = vld [vmem:[#allocation2 + $0x90] sm:$0xff]  ;;  %521 = vmatprep.subr.bf16.mxu1 %v638_v53  ;;  %vm169_vm1 = vcmask 1041408   ;;  %vm281_vm2 = vcmask 1040384   ;;  %vm642_vm10 = vmmov 1  }
  0x16   :  { %v56_v6 = vld [vmem:[#allocation2 + $0x98] sm:$0xff]  ;;  %v491_v7 = vpack.c.bf16 %v38_v4, %v37_v2  ;;  %v39_v9 = vld [vmem:[#allocation2 + $0x10] sm:$0xff]  ;;  %v57_v11 = vld [vmem:[#allocation2 + $0xa0] sm:$0xff]  ;;  %v640_v4 = vmov 0.0   ;;  %vm282_vm3 = vsmask.f32 256 }
  0x17   :  { %v493_v8 = vpack.c.bf16 %v56_v6, %v55_v5  ;;  %v40_v10 = vld [vmem:[#allocation2 + $0x18] sm:$0xff]  ;;  %490 = vmatprep.subr.bf16.mxu0 %v489_v3  ;;  %v58_v12 = vld [vmem:[#allocation2 + $0xa8] sm:$0xff]  ;;  %v41_v15 = vld [vmem:[#allocation2 + $0x20] sm:$0xff]  ;;  %486 = vmatprep.mubr.msk.f32.mxu1 %vm639_vm0, %v640_v4  ;;  %vm342_vm13 = vcmask 1042432   ;;  %vm344_vm14 = vcmask 1043456   ;;  %vm362_vm15 = vcmask 3075  }
  0x18   :  { %492 = vmatpush3.bf16.msra.mxu0 %v491_v7  ;;  %v495_v13 = vpack.c.bf16 %v40_v10, %v39_v9  ;;  %v497_v14 = vpack.c.bf16 %v58_v12, %v57_v11  ;;  %v42_v16 = vld [vmem:[#allocation2 + $0x28] sm:$0xff]  ;;  %v59_v17 = vld [vmem:[#allocation2 + $0xb0] sm:$0xff]  ;;  %v60_v18 = vld [vmem:[#allocation2 + $0xb8] sm:$0xff] }
  0x19   :  { %494 = vmatprep.subr.bf16.mxu0 %v493_v8  ;;  %v499_v19 = vpack.c.bf16 %v42_v16, %v41_v15  ;;  %v501_v20 = vpack.c.bf16 %v60_v18, %v59_v17  ;;  %v43_v21 = vld [vmem:[#allocation2 + $0x30] sm:$0xff]  ;;  %v44_v22 = vld [vmem:[#allocation2 + $0x38] sm:$0xff]  ;;  %v61_v23 = vld [vmem:[#allocation2 + $0xc0] sm:$0xff] }
  0x1a   :  { %v62_v24 = vld [vmem:[#allocation2 + $0xc8] sm:$0xff]  ;;  %v397_v25 = vld.sshfl [vmem:[%s737_s0] sm:$0x33 pattern:$0x76325410]  ;;  %v503_v27 = vpack.c.bf16 %v44_v22, %v43_v21  ;;  %v63_v31 = vld [vmem:[#allocation2 + $0xd0] sm:$0xff] }
  0x1b   :  { %v96_v26 = vcombine.high %v397_v25, %v397_v25  ;;  %v505_v28 = vpack.c.bf16 %v62_v24, %v61_v23  ;;  %v45_v29 = vld [vmem:[#allocation2 + $0x40] sm:$0xff]  ;;  %v46_v30 = vld [vmem:[#allocation2 + $0x48] sm:$0xff]  ;;  %v64_v32 = vld [vmem:[#allocation2 + $0xd8] sm:$0xff] }
  0x1c   :  { %496 = vmatpush3.bf16.msra.mxu0 %v495_v13  ;;  %v507_v33 = vpack.c.bf16 %v46_v30, %v45_v29  ;;  %v509_v34 = vpack.c.bf16 %v64_v32, %v63_v31  ;;  %v47_v35 = vld [vmem:[#allocation2 + $0x50] sm:$0xff]  ;;  %v48_v36 = vld [vmem:[#allocation2 + $0x58] sm:$0xff]  ;;  %v65_v37 = vld [vmem:[#allocation2 + $0xe0] sm:$0xff] }
  0x1d   :  { %498 = vmatprep.subr.bf16.mxu0 %v497_v14  ;;  %163 = vmatprep.mubr.f32.mxu0 %v96_v26  ;;  %v66_v38 = vld [vmem:[#allocation2 + $0xe8] sm:$0xff]  ;;  %v511_v39 = vpack.c.bf16 %v48_v36, %v47_v35  ;;  %v49_v41 = vld [vmem:[#allocation2 + $0x60] sm:$0xff]  ;;  %v67_v43 = vld [vmem:[#allocation2 + $0xf0] sm:$0xff] }
  0x1e   :  { %v513_v40 = vpack.c.bf16 %v66_v38, %v65_v37  ;;  %v50_v42 = vld [vmem:[#allocation2 + $0x68] sm:$0xff]  ;;  %v68_v44 = vld [vmem:[#allocation2 + $0xf8] sm:$0xff]  ;;  %v51_v47 = vld [vmem:[#allocation2 + $0x70] sm:$0xff] }
  0x1f   :  { %v515_v45 = vpack.c.bf16 %v50_v42, %v49_v41  ;;  %v517_v46 = vpack.c.bf16 %v68_v44, %v67_v43  ;;  %v52_v48 = vld [vmem:[#allocation2 + $0x78] sm:$0xff]  ;;  %v69_v50 = vld [vmem:[#allocation2 + $0x100] sm:$0xff]  ;;  %v70_v51 = vld [vmem:[#allocation2 + $0x108] sm:$0xff] }
  0x20   :  { %500 = vmatpush3.bf16.msra.mxu0 %v499_v19  ;;  %v519_v49 = vpack.c.bf16 %v52_v48, %v51_v47  ;;  %v522_v52 = vpack.c.bf16 %v70_v51, %v69_v50  ;;  %v71_v54 = vld [vmem:[#allocation2 + $0x110] sm:$0xff]  ;;  %v72_v55 = vld [vmem:[#allocation2 + $0x118] sm:$0xff]  ;;  %v73_v57 = vld [vmem:[#allocation2 + $0x120] sm:$0xff]  ;;  %v641_v48 = vmov 0  }
  0x21   :  { %502 = vmatprep.subr.bf16.mxu0 %v501_v20  ;;  %v525_v56 = vpack.c.bf16 %v72_v55, %v71_v54  ;;  %v74_v58 = vld [vmem:[#allocation2 + $0x128] sm:$0xff]  ;;  %v75_v60 = vld [vmem:[#allocation2 + $0x130] sm:$0xff]  ;;  %v76_v61 = vld [vmem:[#allocation2 + $0x138] sm:$0xff] }
  0x22   :  { %523 = vmatpush3.bf16.msra.mxu1 %v522_v52  ;;  %v528_v59 = vpack.c.bf16 %v74_v58, %v73_v57  ;;  %v531_v62 = vpack.c.bf16 %v76_v61, %v75_v60  ;;  %v77_v63 = vld [vmem:[#allocation2 + $0x140] sm:$0xff]  ;;  %v78_v0 = vld [vmem:[#allocation2 + $0x148] sm:$0xff]  ;;  %v79_v2 = vld [vmem:[#allocation2 + $0x150] sm:$0xff] }
  0x23   :  { %524 = vmatprep.subr.bf16.mxu1 %v638_v53  ;;  %v534_v1 = vpack.c.bf16 %v78_v0, %v77_v63  ;;  %v80_v3 = vld [vmem:[#allocation2 + $0x158] sm:$0xff]  ;;  %v81_v6 = vld [vmem:[#allocation2 + $0x160] sm:$0xff]  ;;  %v82_v7 = vld [vmem:[#allocation2 + $0x168] sm:$0xff] }
  0x24   :  { %504 = vmatpush3.bf16.msra.mxu0 %v503_v27  ;;  %v537_v5 = vpack.c.bf16 %v80_v3, %v79_v2  ;;  %v540_v8 = vpack.c.bf16 %v82_v7, %v81_v6  ;;  %v83_v9 = vld [vmem:[#allocation2 + $0x170] sm:$0xff]  ;;  %v84_v10 = vld [vmem:[#allocation2 + $0x178] sm:$0xff]  ;;  %v399_v37 = vld [vmem:[#allocation2 + $0x181] ss:$0 sm:$0xff] }
  0x25   :  { %506 = vmatprep.subr.bf16.mxu0 %v505_v28  ;;  %v543_v11 = vpack.c.bf16 %v84_v10, %v83_v9  ;;  %v400_v41 = vld [vmem:[#allocation2 + $0x182] ss:$0 sm:$0xff]  ;;  %vm283_vm5 = vmand %vm281_vm2, %vm282_vm3  ;;  %v36_v52 = vld [vmem:[%s738_s1] sm:$0x3]  ;;  %s643_s1 = smov [#allocation6]  }
  0x26   :  { %526 = vmatpush3.bf16.msra.mxu1 %v525_v56  ;;  %vm302_vm8 = vcmp.gt.f32.partialorder %v36_v52, 0.5  ;;  %v307_v56 = vsel %vm169_vm1, %v36_v52, 0.0  ;;  %v323_v2 = vsub.f32 1.0, %v36_v52 }
  0x27   :  { %527 = vmatprep.subr.bf16.mxu1 %v638_v53  ;;  %v308_v60 = vrot.slane %v307_v56, 4 }
  0x28   :  { %508 = vmatpush3.bf16.msra.mxu0 %v507_v33 }
  0x29   :  { %510 = vmatprep.subr.bf16.mxu0 %v509_v34  ;;  %v398_v34 = vld [vmem:[#allocation2 + $0x180] ss:$0 sm:$0xff] }
  0x2a   :  { %529 = vmatpush3.bf16.msra.mxu1 %v528_v59 }
  0x2b   :  { %530 = vmatprep.subr.bf16.mxu1 %v638_v53 }
  0x2c   :  { %512 = vmatpush3.bf16.msra.mxu0 %v511_v39 }
  0x2d   :  { %514 = vmatprep.subr.bf16.mxu0 %v513_v40 }
  0x2e   :  { %532 = vmatpush3.bf16.msra.mxu1 %v531_v62 }
  0x2f   :  { %533 = vmatprep.subr.bf16.mxu1 %v638_v53 }
  0x30   :  { %516 = vmatpush3.bf16.msra.mxu0 %v515_v45 }
  0x31   :  { %518 = vmatprep.subr.bf16.mxu0 %v517_v46  ;;  %v284_v46 = vld [vmem:[%s742_s5] sm:$0x1] }
  0x32   :  { %535 = vmatpush3.bf16.msra.mxu1 %v534_v1 }
  0x33   :  { %536 = vmatprep.subr.bf16.mxu1 %v638_v53 }
  0x34   :  { %520 = vmatpush3.bf16.msra.mxu0 %v519_v49 }
  0x36   :  { %538 = vmatpush3.bf16.msra.mxu1 %v537_v5  ;;  %v309_v5 = vadd.f32 %v308_v60, %v307_v56 }
  0x37   :  { %164 = vmatmul.mubr.f32.vlgmr.msra.gmra.mrb[0].mxu0 %v397_v25  ;;  %539 = vmatprep.subr.bf16.mxu1 %v638_v53 }
  0x38   :  { %v310_v10 = vrot.slane %v309_v5, 2 }
  0x3a   :  { %541 = vmatpush3.bf16.msra.mxu1 %v540_v8 }
  0x3b   :  { %542 = vmatprep.subr.bf16.mxu1 %v638_v53 }
  0x3e   :  { %544 = vmatpush3.bf16.msra.mxu1 %v543_v11 }
 0x10a   :  { %v434_v12 = vpop.f32.mrb[0].mxu0 }
 0x10b   :  { %v435_v13 = vpop.f32.mrb[1].mxu0 }
 0x10c   :  { %v436_v14 = vadd.f32 %v435_v13, %v434_v12 }
 0x10e   :  { %v170_v15 = vsel %vm169_vm1, %v436_v14, 0.0 }
 0x10f   :  { %v171_v16 = vrot.slane %v170_v15, 4 }
 0x111   :  { %v172_v17 = vadd.f32 %v171_v16, %v170_v15  ;;  %v311_v16 = vadd.f32 %v310_v10, %v309_v5 }
 0x113   :  { %v173_v18 = vrot.slane %v172_v17, 2 }
 0x115   :  { %v174_v19 = vadd.f32 %v173_v18, %v172_v17 }
 0x117   :  { %v175_v20 = vrot.slane %v174_v19, 1 }
 0x119   :  { %v176_v21 = vadd.f32 %v175_v20, %v174_v19 }
 0x11b   :  { %v178_v22 = vmul.f32 0.5, %v176_v21  ;;  %v312_v21 = vrot.slane %v311_v16, 1 }
 0x11d   :  { %v179_v23 = vsub.f32 %v436_v14, %v178_v22 }
 0x11f   :  { %v180_v24 = vmul.f32 %v179_v23, %v179_v23  ;;  %v193_v35 = vmul.f32 %v398_v34, %v179_v23 }
 0x121   :  { %v181_v25 = vsel %vm169_vm1, %v180_v24, 0.0 }
 0x122   :  { %v182_v26 = vrot.slane %v181_v25, 4 }
 0x124   :  { %v183_v27 = vadd.f32 %v182_v26, %v181_v25 }
 0x126   :  { %v184_v28 = vrot.slane %v183_v27, 2 }
 0x128   :  { %v185_v29 = vadd.f32 %v184_v28, %v183_v27  ;;  %v313_v27 = vadd.f32 %v312_v21, %v311_v16 }
 0x12a   :  { %v186_v30 = vrot.slane %v185_v29, 1 }
 0x12c   :  { %v187_v31 = vadd.f32 %v186_v30, %v185_v29 }
 0x12e   :  { %v188_v32 = vmul.f32 0.5, %v187_v31 }
 0x130   :  { %v194_v33 = vadd.f32 1e-05, %v188_v32 }
 0x132   :  { %555 = vrsqrt.f32 %v194_v33 }
 0x13c   :  { %v556_v36 = vpop.eup %555 }
 0x13d   :  { %v196_v38 = vmul.f32 %v556_v36, %v193_v35 }
 0x13f   :  { %v201_v39 = vadd.f32 %v399_v37, %v196_v38 }
 0x141   :  { %v202_v40 = vmax.f32 %v201_v39, 0.0 }
 0x143   :  { %487 = vmatmul.mubr.f32.vlgmr.msra.gmra.mrb[0].mxu1 %v202_v40 }
 0x216   :  { %v273_v42 = vpop.f32.mrb[0].mxu1 }
 0x217   :  { %v274_v43 = vadd.f32 %v400_v41, %v273_v42  ;;  %v488_v44 = vpop.f32.mrb[1].mxu1 }
 0x219   :  { %vm277_vm4 = vcmp.gt.f32.partialorder %v274_v43, 0.0  ;;  %v288_v45 = vand.u32 2147483647, %v274_v43  ;;  %v287_v1 = vmax.f32 %v274_v43, 0.0 }
 0x21a   :  { %vm278_vm6 = vmpackc.low %vm277_vm4, %vm277_vm4 }
 0x21b   :  { %vm279_vm7 = vmpackc.even %vm278_vm6, %vm278_vm6  ;;  %v289_v47 = vsub.f32 0.0, %v288_v45 }
 0x21c   :  { %v280_v49 = vsel %vm279_vm7, 16843009, %v641_v48  ;;  %vm303_vm9 = vmxor %vm277_vm4, %vm302_vm8 }
 0x21d   :  { %v290_v50 = vmul.f32 1.442695, %v289_v47  ;;  %v285_v51 = vsel %vm283_vm5, %v280_v49, %v284_v46  ;;  %vm304_vm11 = vmxor %vm303_vm9, %vm642_vm10 }
 0x21e   :  { %286 = vst [vmem:[%s742_s5] sm:$0x1] %v285_v51  ;;  %v401_v58 = vsel %vm304_vm11, 1.0, %v640_v4  ;;  %s380_s5 = sshll.u32 %s643_s1, 4  ;;  %s381_s5 = int_to_ptr.vmem [resolvable:$true] %s380_s5 }
 0x21f   :  { %557 = vpow2.f32 %v290_v50  ;;  %v332_v62 = vsel %vm169_vm1, %v401_v58, 0.0  ;;  %s585_s13 = scalar_lea.vmem %s381_s5, 16  ;;  %s589_s14 = scalar_lea.vmem %s381_s5, 32 }
 0x220   :  { %v333_v6 = vrot.slane %v332_v62, 4  ;;  %p586_p8 = scmp.ne.s32.totalorder %s381_s5, %s585_s13  ;;  %p590_p9 = scmp.lt.s32.totalorder %s381_s5, %s381_s5 }
 0x221   :  { %p591_p10 = scmp.lt.s32.totalorder %s589_s14, %s585_s13 }
 0x222   :  { %v334_v11 = vadd.f32 %v333_v6, %v332_v62 }
 0x223   :  { %p592_p11 = por %p591_p10, %p590_p9 }
 0x224   :  { %v335_v18 = vrot.slane %v334_v11, 2 }
 0x225   :  { %p593_p12 = pnand %p592_p11, %p586_p8 }
 0x226   :  { %v336_v24 = vadd.f32 %v335_v18, %v334_v11 }
 0x228   :  { %v337_v29 = vrot.slane %v336_v24, 1 }
 0x229   :  { %v558_v53 = vpop.eup %557 }
 0x22a   :  { %v292_v54 = vadd.f32 1.0, %v558_v53  ;;  %v295_v55 = vmul.f32 -0.5, %v558_v53  ;;  %v298_v59 = vand.u32 2147483647, %v558_v53  ;;  %v338_v32 = vadd.f32 %v337_v29, %v336_v24 }
 0x22c   :  { %559 = vlog2.f32 %v292_v54  ;;  %v296_v57 = vadd.f32 1.0, %v295_v55  ;;  %vm299_vm12 = vcmp.lt.f32.partialorder %v298_v59, 0.0004427343 }
 0x22e   :  { %v297_v0 = vmul.f32 %v558_v53, %v296_v57 }
 0x236   :  { %v560_v61 = vpop.eup %559 }
 0x237   :  { %v294_v63 = vmul.f32 0.6931472, %v560_v61 }
 0x239   :  { %v300_v3 = vsel %vm299_vm12, %v297_v0, %v294_v63 }
 0x23a   :  { %v301_v7 = vadd.f32 %v300_v3, %v287_v1 }
 0x23c   :  { %v314_v8 = vsub.f32 %v301_v7, %v274_v43  ;;  %v324_v9 = vmul.f32 %v323_v2, %v301_v7 }
 0x23e   :  { %v315_v12 = vmul.f32 %v314_v8, %v36_v52  ;;  %v325_v4 = vsel %vm169_vm1, %v324_v9, 0.0 }
 0x23f   :  { %v326_v13 = vrot.slane %v325_v4, 4 }
 0x240   :  { %v316_v14 = vsel %vm169_vm1, %v315_v12, 0.0 }
 0x241   :  { %v317_v15 = vrot.slane %v316_v14, 4  ;;  %v327_v17 = vadd.f32 %v326_v13, %v325_v4 }
 0x243   :  { %v318_v19 = vadd.f32 %v317_v15, %v316_v14  ;;  %v328_v20 = vrot.slane %v327_v17, 2 }
 0x245   :  { %v319_v22 = vrot.slane %v318_v19, 2  ;;  %v329_v23 = vadd.f32 %v328_v20, %v327_v17 }
 0x247   :  { %v320_v25 = vadd.f32 %v319_v22, %v318_v19  ;;  %v330_v26 = vrot.slane %v329_v23, 1 }
 0x249   :  { %v321_v28 = vrot.slane %v320_v25, 1  ;;  %v331_v31 = vadd.f32 %v330_v26, %v329_v23 }
 0x24b   :  { %v322_v30 = vadd.f32 %v321_v28, %v320_v25 }
 0x24d   :  { %v340_v33 = vsel %vm281_vm2, %v313_v27, %v322_v30 }
 0x24e   :  { %v341_v34 = vsel %vm169_vm1, %v340_v33, %v331_v31 }
 0x24f   :  { %v343_v35 = vsel %vm342_vm13, %v341_v34, %v338_v32 }
 0x250   :  { %v345_v36 = vsel %vm344_vm14, %v343_v35, 0.0 }
 0x251   :  { %346 = vadd.xlane.f32.xlu0 %v345_v36 }
 0x2de   :  { %v347_v37 = vpop.xlane.xlu0 %346 }
 0x2df   :  { %561 = vrcp.f32 %v347_v37  ;;  %v361_v38 = vmul.f32 0.00390625, %v347_v37 }
 0x2e1   :  { %363 = vst.msk [vmem:[#allocation6 - $0x3] sm:$0x8] %vm362_vm15, %v361_v38 }
 0x2e2   :  { %596 = shalt.err (!%p593_p12)
}
 0x2e3   :  { %s597_s17 = scalar_lea.hbm %s741_s4, 16 }
 0x2e4   :  { %p598_p13 = scmp.ne.s32.totalorder %s741_s4, %s597_s17  ;;  %p601_p0 = scmp.lt.u32.totalorder %s597_s17, %s741_s4 }
 0x2e6   :  { %p603_p1 = pnand %p601_p0, %p598_p13 }
 0x2e8   :  { %606 = shalt.err (!%p603_p1)
}
 0x2e9   :  { %383 = dma.vmem_to_hbm [thread:$0]  %s381_s5, 16, %s741_s4, [#allocation7]   ;;  %v348_v39 = vsub.f32 256.0, %v347_v37  ;;  %v562_v40 = vpop.eup %561  ;;  %v352_v42 = vrot.slane %v347_v37, 1  ;;  %v355_v44 = vrot.slane %v347_v37, 2  ;;  %vm359_vm0 = vcmask 0  }
 0x2ea   :  { %s644_s24 = smov [#allocation5]  }
 0x2eb   :  { %v350_v41 = vmul.f32 %v562_v40, %v348_v39  ;;  %s370_s25 = sshll.u32 %s644_s24, 4  ;;  %s371_s25 = int_to_ptr.vmem [resolvable:$true] %s370_s25 }
 0x2ec   :  { %s607_s26 = scalar_lea.vmem %s371_s25, 16  ;;  %s611_s27 = scalar_lea.vmem %s371_s25, 32 }
 0x2ed   :  { %v354_v43 = vmul.f32 %v352_v42, %v350_v41  ;;  %p608_p2 = scmp.ne.s32.totalorder %s371_s25, %s607_s26  ;;  %p612_p3 = scmp.lt.s32.totalorder %s371_s25, %s371_s25 }
 0x2ee   :  { %p613_p4 = scmp.lt.s32.totalorder %s611_s27, %s607_s26 }
 0x2ef   :  { %v357_v45 = vadd.f32 %v355_v44, %v354_v43 }
 0x2f0   :  { %p614_p5 = por %p613_p4, %p612_p3 }
 0x2f1   :  { %v358_v46 = vmul.f32 0.00390625, %v357_v45 }
 0x2f2   :  { %p615_p6 = pnand %p614_p5, %p608_p2 }
 0x2f3   :  { %360 = vst.msk [vmem:[#allocation5] sm:$0x1] %vm359_vm0, %v358_v46 }
 0x2f4   :  { %618 = shalt.err (!%p615_p6)
}
 0x2f5   :  { %s619_s29 = scalar_lea.hbm %s740_s3, 16 }
 0x2f6   :  { %p620_p7 = scmp.ne.s32.totalorder %s740_s3, %s619_s29  ;;  %p623_p8 = scmp.lt.u32.totalorder %s619_s29, %s740_s3 }
 0x2f8   :  { %p625_p9 = pnand %p623_p8, %p620_p7 }
 0x2fa   :  { %628 = shalt.err (!%p625_p9)
}
 0x2fb   :  { %373 = dma.vmem_to_hbm [thread:$0]  %s371_s25, 16, %s740_s3, [#allocation4]  }
 0x2fc   :  { %631 = dma.done.wait [#allocation4], 16  }
 0x2fd   :  { %632 = vsyncadd [#allocation4], 4294967280 }
 0x2fe   :  { %633 = dma.done.wait [#allocation7], 16  }
 0x2ff   :  { %634 = vsyncadd [#allocation7], 4294967280 }
 0x300   :  { %394 = vsyncpa [#allocation3], 1 }
 0x301   :  { %395 = vsyncpa [#allocation4], 1 }
 0x302   :  { %396 = vsyncpa [#allocation7], 1 }

</bundles_post_ra>
